<compile_context>
chip_gen: v7x
topology: tpu7x:2x2x1
jax: 0.10.0
libtpu: 0.0.40
codegen_flags: <defaults>
</compile_context>

<pallas_src>
import jax
import jax.numpy as jnp
from jax.experimental import pallas as pl
from jax.experimental.pallas import tpu as pltpu


def cbow_kernel(ctx_ref, emb_ref, w_ref, b_ref, out_ref, mean_ref):
    # ctx_ref : (Bp, C) int32 in SMEM (scalar-prefetched)
    # emb_ref : (Ve, Ep) f32 embedding table, resident in VMEM
    # w_ref   : (Ep, tv) pre-transposed linear weight tile (f32 or bf16)
    # b_ref   : (1, tv)  f32 bias tile
    # out_ref : (tb, tv) f32 output tile
    # mean_ref: (tb, Ep) f32 scratch holding the mean embedding of this batch tile
    i = pl.program_id(0)          # batch-tile index
    j = pl.program_id(1)          # vocab-tile index
    tb, _ = mean_ref.shape
    C = ctx_ref.shape[1]
    inv_c = 1.0 / C

    # ---- gather + mean: computed once per batch tile, reused for all vocab tiles
    @pl.when(j == 0)
    def _():
        for b in range(tb):                                   # tb small & static
            row = i * tb + b
            acc = emb_ref[pl.ds(ctx_ref[row, 0], 1), :].astype(jnp.float32)
            for c in range(1, C):                             # C tiny & static
                acc = acc + emb_ref[pl.ds(ctx_ref[row, c], 1), :].astype(jnp.float32)
            mean_ref[pl.ds(b, 1), :] = acc * inv_c

    # ---- Linear: (tb, Ep) @ (Ep, tv) + bias -> lane-dense (tb, tv) output tile
    lhs = mean_ref[...].astype(w_ref.dtype)     # bf16 lhs when W is bf16 (f32 acc)
    logits = jnp.dot(lhs, w_ref[...], preferred_element_type=jnp.float32)
    out_ref[...] = logits + b_ref[...]


def _round_up(x, m):
    return ((x + m - 1) // m) * m


def cbow_forward(context_words, emb_table, lin_w, lin_b, *,
                 param_dtype=jnp.float32, tb=None, tv=None):
    """Pallas CBOW forward. lin_w is the PyTorch nn.Linear weight (V, E)."""
    B, C = context_words.shape
    V, E = emb_table.shape

    # ---- TPU-friendly tiles / padding ------------------------------------
    if tb is None:
        tb = min(_round_up(B, 8), 128)      # sublane-aligned batch tile
    if tv is None:
        tv = min(_round_up(V, 128), 512)    # lane-dense vocab tile (mult. of 128)
    Bp = _round_up(B, tb)
    Vp = _round_up(V, tv)
    Ep = _round_up(E, 128)                  # lane-dense emb rows / MXU K dim
    Ve = _round_up(V, 8)                    # sublane-aligned embedding table rows

    # Clamp indices so padded / out-of-range values never read outside the
    # table (PyTorch's nn.Embedding would raise; we fail safe instead).
    ctx = jnp.clip(context_words.astype(jnp.int32), 0, V - 1)
    ctx = jnp.pad(ctx, ((0, Bp - B), (0, 0)))

    emb = jnp.pad(emb_table, ((0, Ve - V), (0, Ep - E))).astype(jnp.float32)
    w_t = jnp.pad(lin_w.T, ((0, Ep - E), (0, Vp - V))).astype(param_dtype)
    bias = jnp.pad(lin_b, (0, Vp - V)).reshape(1, Vp).astype(jnp.float32)

    grid = (Bp // tb, Vp // tv)
    out = pl.pallas_call(
        cbow_kernel,
        out_shape=jax.ShapeDtypeStruct((Bp, Vp), jnp.float32),
        grid_spec=pltpu.PrefetchScalarGridSpec(
            num_scalar_prefetch=1,
            grid=grid,
            in_specs=[
                # embedding table: resident across the whole grid
                pl.BlockSpec((Ve, Ep), lambda i, j, ctx_s: (0, 0)),
                # W^T tile for this vocab tile
                pl.BlockSpec((Ep, tv), lambda i, j, ctx_s: (0, j)),
                # bias tile
                pl.BlockSpec((1, tv), lambda i, j, ctx_s: (0, j)),
            ],
            out_specs=pl.BlockSpec((tb, tv), lambda i, j, ctx_s: (i, j)),
            scratch_shapes=[pltpu.VMEM((tb, Ep), jnp.float32)],
        ),
        compiler_params=pltpu.CompilerParams(
            dimension_semantics=("parallel", "arbitrary"),
            vmem_limit_bytes=32 * 1024 * 1024,
        ),
    )(ctx, emb, w_t, bias)
    return out[:B, :V]


if __name__ == "__main__":
    vocab_size = 64
    embedding_dim = 16
    batch = 2
    context_size = 4   # CBOW window of 2 on each side

    key = jax.random.PRNGKey(0)
    k_emb, k_w, k_b, k_ctx = jax.random.split(key, 4)

    # nn.Embedding default init: N(0, 1)
    emb_table = jax.random.normal(k_emb, (vocab_size, embedding_dim), jnp.float32)
    # nn.Linear default init: U(-1/sqrt(in), 1/sqrt(in))
    bound = 1.0 / (embedding_dim ** 0.5)
    lin_w = jax.random.uniform(k_w, (vocab_size, embedding_dim), jnp.float32,
                               minval=-bound, maxval=bound)
    lin_b = jax.random.uniform(k_b, (vocab_size,), jnp.float32,
                               minval=-bound, maxval=bound)

    context_words = jax.random.randint(
        k_ctx, (batch, context_size), 0, vocab_size, dtype=jnp.int32)

    # Pure-JAX reference (PyTorch forward semantics, f32).
    ref = jnp.mean(emb_table[context_words], axis=1) @ lin_w.T + lin_b

    # 1) exact-precision run (f32 weights) — tight tolerance.
    out_f32 = jax.block_until_ready(
        cbow_forward(context_words, emb_table, lin_w, lin_b,
                     param_dtype=jnp.float32))
    assert out_f32.shape == (batch, vocab_size)
    assert jnp.allclose(out_f32, ref, rtol=1e-5, atol=1e-5), "f32 mismatch vs reference"

    # 2) bf16-weight run (v6e/v7x HBM-bandwidth config; f32 MXU accumulation).
    #    Tolerance relaxed for bf16 parameters, per the performance review.
    out_bf16 = jax.block_until_ready(
        cbow_forward(context_words, emb_table, lin_w, lin_b,
                     param_dtype=jnp.bfloat16))
    assert out_bf16.shape == (batch, vocab_size)
    assert jnp.allclose(out_bf16, ref, rtol=5e-2, atol=5e-2), "bf16 mismatch vs reference"

    print("KERNEL_OK")
</pallas_src>

<mosaic_0001>
module attributes {stable_mosaic.version = 11 : i64} {
  func.func @cbow_kernel(%arg0: i32, %arg1: i32, %arg2: memref<8x4xi32, #tpu.memory_space<smem>>, %arg3: memref<64x128xf32, #tpu.memory_space<vmem>>, %arg4: memref<128x128xf32, #tpu.memory_space<vmem>>, %arg5: memref<1x128xf32, #tpu.memory_space<vmem>>, %arg6: memref<8x128xf32, #tpu.memory_space<vmem>>, %arg7: memref<8x128xf32, #tpu.memory_space<vmem>>) attributes {dimension_semantics = [#tpu.dimension_semantics<parallel>, #tpu.dimension_semantics<arbitrary>], iteration_bounds = array<i64: 1, 1>, scalar_prefetch = 1 : i64, scratch_operands = 1 : i64, tpu.core_type = #tpu.core_type<tc>, window_params = [{pipeline_mode = #tpu.pipeline_mode<synchronous>, transform_indices = @transform_0, window_bounds = array<i64: 64, 128>}, {transform_indices = @transform_1, window_bounds = array<i64: 128, 128>}, {transform_indices = @transform_2, window_bounds = array<i64: 1, 128>}, {transform_indices = @transform_3, window_bounds = array<i64: 8, 128>}]} {
    %c0_i32 = arith.constant 0 : i32
    %0 = arith.cmpi eq, %arg1, %c0_i32 : i32
    %1 = arith.extui %0 : i1 to i32
    %c0_i32_0 = arith.constant 0 : i32
    %2 = arith.cmpi ne, %1, %c0_i32_0 : i32
    scf.if %2 {
      %c8_i32 = arith.constant 8 : i32
      %10 = arith.muli %arg0, %c8_i32 : i32
      %c0_i32_8 = arith.constant 0 : i32
      %11 = arith.addi %10, %c0_i32_8 : i32
      %12 = arith.index_cast %11 : i32 to index
      %c0_9 = arith.constant 0 : index
      %13 = memref.load %arg2[%12, %c0_9] : memref<8x4xi32, #tpu.memory_space<smem>>
      %14 = arith.index_cast %13 : i32 to index
      %c0_10 = arith.constant 0 : index
      %15 = vector.load %arg3[%14, %c0_10] : memref<64x128xf32, #tpu.memory_space<vmem>>, vector<1x128xf32>
      %16 = arith.index_cast %11 : i32 to index
      %c1 = arith.constant 1 : index
      %17 = memref.load %arg2[%16, %c1] : memref<8x4xi32, #tpu.memory_space<smem>>
      %18 = arith.index_cast %17 : i32 to index
      %c0_11 = arith.constant 0 : index
      %19 = vector.load %arg3[%18, %c0_11] : memref<64x128xf32, #tpu.memory_space<vmem>>, vector<1x128xf32>
      %20 = arith.addf %15, %19 : vector<1x128xf32>
      %21 = arith.index_cast %11 : i32 to index
      %c2 = arith.constant 2 : index
      %22 = memref.load %arg2[%21, %c2] : memref<8x4xi32, #tpu.memory_space<smem>>
      %23 = arith.index_cast %22 : i32 to index
      %c0_12 = arith.constant 0 : index
      %24 = vector.load %arg3[%23, %c0_12] : memref<64x128xf32, #tpu.memory_space<vmem>>, vector<1x128xf32>
      %25 = arith.addf %20, %24 : vector<1x128xf32>
      %26 = arith.index_cast %11 : i32 to index
      %c3 = arith.constant 3 : index
      %27 = memref.load %arg2[%26, %c3] : memref<8x4xi32, #tpu.memory_space<smem>>
      %28 = arith.index_cast %27 : i32 to index
      %c0_13 = arith.constant 0 : index
      %29 = vector.load %arg3[%28, %c0_13] : memref<64x128xf32, #tpu.memory_space<vmem>>, vector<1x128xf32>
      %30 = arith.addf %25, %29 : vector<1x128xf32>
      %cst_14 = arith.constant 2.500000e-01 : f32
      %31 = vector.broadcast %cst_14 : f32 to vector<1x128xf32>
      %32 = arith.mulf %30, %31 : vector<1x128xf32>
      %c0_15 = arith.constant 0 : index
      %c0_16 = arith.constant 0 : index
      %33 = vector.load %arg7[%c0_15, %c0_16] : memref<8x128xf32, #tpu.memory_space<vmem>>, vector<1x128xf32>
      tpu.vector_store %arg7[%c0_15, %c0_16], %32 {strides = array<i32>} : memref<8x128xf32, #tpu.memory_space<vmem>>, vector<1x128xf32>,
      %c8_i32_17 = arith.constant 8 : i32
      %34 = arith.muli %arg0, %c8_i32_17 : i32
      %c1_i32 = arith.constant 1 : i32
      %35 = arith.addi %34, %c1_i32 : i32
      %36 = arith.index_cast %35 : i32 to index
      %c0_18 = arith.constant 0 : index
      %37 = memref.load %arg2[%36, %c0_18] : memref<8x4xi32, #tpu.memory_space<smem>>
      %38 = arith.index_cast %37 : i32 to index
      %c0_19 = arith.constant 0 : index
      %39 = vector.load %arg3[%38, %c0_19] : memref<64x128xf32, #tpu.memory_space<vmem>>, vector<1x128xf32>
      %40 = arith.index_cast %35 : i32 to index
      %c1_20 = arith.constant 1 : index
      %41 = memref.load %arg2[%40, %c1_20] : memref<8x4xi32, #tpu.memory_space<smem>>
      %42 = arith.index_cast %41 : i32 to index
      %c0_21 = arith.constant 0 : index
      %43 = vector.load %arg3[%42, %c0_21] : memref<64x128xf32, #tpu.memory_space<vmem>>, vector<1x128xf32>
      %44 = arith.addf %39, %43 : vector<1x128xf32>
      %45 = arith.index_cast %35 : i32 to index
      %c2_22 = arith.constant 2 : index
      %46 = memref.load %arg2[%45, %c2_22] : memref<8x4xi32, #tpu.memory_space<smem>>
      %47 = arith.index_cast %46 : i32 to index
      %c0_23 = arith.constant 0 : index
      %48 = vector.load %arg3[%47, %c0_23] : memref<64x128xf32, #tpu.memory_space<vmem>>, vector<1x128xf32>
      %49 = arith.addf %44, %48 : vector<1x128xf32>
      %50 = arith.index_cast %35 : i32 to index
      %c3_24 = arith.constant 3 : index
      %51 = memref.load %arg2[%50, %c3_24] : memref<8x4xi32, #tpu.memory_space<smem>>
      %52 = arith.index_cast %51 : i32 to index
      %c0_25 = arith.constant 0 : index
      %53 = vector.load %arg3[%52, %c0_25] : memref<64x128xf32, #tpu.memory_space<vmem>>, vector<1x128xf32>
      %54 = arith.addf %49, %53 : vector<1x128xf32>
      %cst_26 = arith.constant 2.500000e-01 : f32
      %55 = vector.broadcast %cst_26 : f32 to vector<1x128xf32>
      %56 = arith.mulf %54, %55 : vector<1x128xf32>
      %c1_27 = arith.constant 1 : index
      %c0_28 = arith.constant 0 : index
      %57 = vector.load %arg7[%c1_27, %c0_28] : memref<8x128xf32, #tpu.memory_space<vmem>>, vector<1x128xf32>
      tpu.vector_store %arg7[%c1_27, %c0_28], %56 {strides = array<i32>} : memref<8x128xf32, #tpu.memory_space<vmem>>, vector<1x128xf32>,
      %c8_i32_29 = arith.constant 8 : i32
      %58 = arith.muli %arg0, %c8_i32_29 : i32
      %c2_i32 = arith.constant 2 : i32
      %59 = arith.addi %58, %c2_i32 : i32
      %60 = arith.index_cast %59 : i32 to index
      %c0_30 = arith.constant 0 : index
      %61 = memref.load %arg2[%60, %c0_30] : memref<8x4xi32, #tpu.memory_space<smem>>
      %62 = arith.index_cast %61 : i32 to index
      %c0_31 = arith.constant 0 : index
      %63 = vector.load %arg3[%62, %c0_31] : memref<64x128xf32, #tpu.memory_space<vmem>>, vector<1x128xf32>
      %64 = arith.index_cast %59 : i32 to index
      %c1_32 = arith.constant 1 : index
      %65 = memref.load %arg2[%64, %c1_32] : memref<8x4xi32, #tpu.memory_space<smem>>
      %66 = arith.index_cast %65 : i32 to index
      %c0_33 = arith.constant 0 : index
      %67 = vector.load %arg3[%66, %c0_33] : memref<64x128xf32, #tpu.memory_space<vmem>>, vector<1x128xf32>
      %68 = arith.addf %63, %67 : vector<1x128xf32>
      %69 = arith.index_cast %59 : i32 to index
      %c2_34 = arith.constant 2 : index
      %70 = memref.load %arg2[%69, %c2_34] : memref<8x4xi32, #tpu.memory_space<smem>>
      %71 = arith.index_cast %70 : i32 to index
      %c0_35 = arith.constant 0 : index
      %72 = vector.load %arg3[%71, %c0_35] : memref<64x128xf32, #tpu.memory_space<vmem>>, vector<1x128xf32>
      %73 = arith.addf %68, %72 : vector<1x128xf32>
      %74 = arith.index_cast %59 : i32 to index
      %c3_36 = arith.constant 3 : index
      %75 = memref.load %arg2[%74, %c3_36] : memref<8x4xi32, #tpu.memory_space<smem>>
      %76 = arith.index_cast %75 : i32 to index
      %c0_37 = arith.constant 0 : index
      %77 = vector.load %arg3[%76, %c0_37] : memref<64x128xf32, #tpu.memory_space<vmem>>, vector<1x128xf32>
      %78 = arith.addf %73, %77 : vector<1x128xf32>
      %cst_38 = arith.constant 2.500000e-01 : f32
      %79 = vector.broadcast %cst_38 : f32 to vector<1x128xf32>
      %80 = arith.mulf %78, %79 : vector<1x128xf32>
      %c2_39 = arith.constant 2 : index
      %c0_40 = arith.constant 0 : index
      %81 = vector.load %arg7[%c2_39, %c0_40] : memref<8x128xf32, #tpu.memory_space<vmem>>, vector<1x128xf32>
      tpu.vector_store %arg7[%c2_39, %c0_40], %80 {strides = array<i32>} : memref<8x128xf32, #tpu.memory_space<vmem>>, vector<1x128xf32>,
      %c8_i32_41 = arith.constant 8 : i32
      %82 = arith.muli %arg0, %c8_i32_41 : i32
      %c3_i32 = arith.constant 3 : i32
      %83 = arith.addi %82, %c3_i32 : i32
      %84 = arith.index_cast %83 : i32 to index
      %c0_42 = arith.constant 0 : index
      %85 = memref.load %arg2[%84, %c0_42] : memref<8x4xi32, #tpu.memory_space<smem>>
      %86 = arith.index_cast %85 : i32 to index
      %c0_43 = arith.constant 0 : index
      %87 = vector.load %arg3[%86, %c0_43] : memref<64x128xf32, #tpu.memory_space<vmem>>, vector<1x128xf32>
      %88 = arith.index_cast %83 : i32 to index
      %c1_44 = arith.constant 1 : index
      %89 = memref.load %arg2[%88, %c1_44] : memref<8x4xi32, #tpu.memory_space<smem>>
      %90 = arith.index_cast %89 : i32 to index
      %c0_45 = arith.constant 0 : index
      %91 = vector.load %arg3[%90, %c0_45] : memref<64x128xf32, #tpu.memory_space<vmem>>, vector<1x128xf32>
      %92 = arith.addf %87, %91 : vector<1x128xf32>
      %93 = arith.index_cast %83 : i32 to index
      %c2_46 = arith.constant 2 : index
      %94 = memref.load %arg2[%93, %c2_46] : memref<8x4xi32, #tpu.memory_space<smem>>
      %95 = arith.index_cast %94 : i32 to index
      %c0_47 = arith.constant 0 : index
      %96 = vector.load %arg3[%95, %c0_47] : memref<64x128xf32, #tpu.memory_space<vmem>>, vector<1x128xf32>
      %97 = arith.addf %92, %96 : vector<1x128xf32>
      %98 = arith.index_cast %83 : i32 to index
      %c3_48 = arith.constant 3 : index
      %99 = memref.load %arg2[%98, %c3_48] : memref<8x4xi32, #tpu.memory_space<smem>>
      %100 = arith.index_cast %99 : i32 to index
      %c0_49 = arith.constant 0 : index
      %101 = vector.load %arg3[%100, %c0_49] : memref<64x128xf32, #tpu.memory_space<vmem>>, vector<1x128xf32>
      %102 = arith.addf %97, %101 : vector<1x128xf32>
      %cst_50 = arith.constant 2.500000e-01 : f32
      %103 = vector.broadcast %cst_50 : f32 to vector<1x128xf32>
      %104 = arith.mulf %102, %103 : vector<1x128xf32>
      %c3_51 = arith.constant 3 : index
      %c0_52 = arith.constant 0 : index
      %105 = vector.load %arg7[%c3_51, %c0_52] : memref<8x128xf32, #tpu.memory_space<vmem>>, vector<1x128xf32>
      tpu.vector_store %arg7[%c3_51, %c0_52], %104 {strides = array<i32>} : memref<8x128xf32, #tpu.memory_space<vmem>>, vector<1x128xf32>,
      %c8_i32_53 = arith.constant 8 : i32
      %106 = arith.muli %arg0, %c8_i32_53 : i32
      %c4_i32 = arith.constant 4 : i32
      %107 = arith.addi %106, %c4_i32 : i32
      %108 = arith.index_cast %107 : i32 to index
      %c0_54 = arith.constant 0 : index
      %109 = memref.load %arg2[%108, %c0_54] : memref<8x4xi32, #tpu.memory_space<smem>>
      %110 = arith.index_cast %109 : i32 to index
      %c0_55 = arith.constant 0 : index
      %111 = vector.load %arg3[%110, %c0_55] : memref<64x128xf32, #tpu.memory_space<vmem>>, vector<1x128xf32>
      %112 = arith.index_cast %107 : i32 to index
      %c1_56 = arith.constant 1 : index
      %113 = memref.load %arg2[%112, %c1_56] : memref<8x4xi32, #tpu.memory_space<smem>>
      %114 = arith.index_cast %113 : i32 to index
      %c0_57 = arith.constant 0 : index
      %115 = vector.load %arg3[%114, %c0_57] : memref<64x128xf32, #tpu.memory_space<vmem>>, vector<1x128xf32>
      %116 = arith.addf %111, %115 : vector<1x128xf32>
      %117 = arith.index_cast %107 : i32 to index
      %c2_58 = arith.constant 2 : index
      %118 = memref.load %arg2[%117, %c2_58] : memref<8x4xi32, #tpu.memory_space<smem>>
      %119 = arith.index_cast %118 : i32 to index
      %c0_59 = arith.constant 0 : index
      %120 = vector.load %arg3[%119, %c0_59] : memref<64x128xf32, #tpu.memory_space<vmem>>, vector<1x128xf32>
      %121 = arith.addf %116, %120 : vector<1x128xf32>
      %122 = arith.index_cast %107 : i32 to index
      %c3_60 = arith.constant 3 : index
      %123 = memref.load %arg2[%122, %c3_60] : memref<8x4xi32, #tpu.memory_space<smem>>
      %124 = arith.index_cast %123 : i32 to index
      %c0_61 = arith.constant 0 : index
      %125 = vector.load %arg3[%124, %c0_61] : memref<64x128xf32, #tpu.memory_space<vmem>>, vector<1x128xf32>
      %126 = arith.addf %121, %125 : vector<1x128xf32>
      %cst_62 = arith.constant 2.500000e-01 : f32
      %127 = vector.broadcast %cst_62 : f32 to vector<1x128xf32>
      %128 = arith.mulf %126, %127 : vector<1x128xf32>
      %c4 = arith.constant 4 : index
      %c0_63 = arith.constant 0 : index
      %129 = vector.load %arg7[%c4, %c0_63] : memref<8x128xf32, #tpu.memory_space<vmem>>, vector<1x128xf32>
      tpu.vector_store %arg7[%c4, %c0_63], %128 {strides = array<i32>} : memref<8x128xf32, #tpu.memory_space<vmem>>, vector<1x128xf32>,
      %c8_i32_64 = arith.constant 8 : i32
      %130 = arith.muli %arg0, %c8_i32_64 : i32
      %c5_i32 = arith.constant 5 : i32
      %131 = arith.addi %130, %c5_i32 : i32
      %132 = arith.index_cast %131 : i32 to index
      %c0_65 = arith.constant 0 : index
      %133 = memref.load %arg2[%132, %c0_65] : memref<8x4xi32, #tpu.memory_space<smem>>
      %134 = arith.index_cast %133 : i32 to index
      %c0_66 = arith.constant 0 : index
      %135 = vector.load %arg3[%134, %c0_66] : memref<64x128xf32, #tpu.memory_space<vmem>>, vector<1x128xf32>
      %136 = arith.index_cast %131 : i32 to index
      %c1_67 = arith.constant 1 : index
      %137 = memref.load %arg2[%136, %c1_67] : memref<8x4xi32, #tpu.memory_space<smem>>
      %138 = arith.index_cast %137 : i32 to index
      %c0_68 = arith.constant 0 : index
      %139 = vector.load %arg3[%138, %c0_68] : memref<64x128xf32, #tpu.memory_space<vmem>>, vector<1x128xf32>
      %140 = arith.addf %135, %139 : vector<1x128xf32>
      %141 = arith.index_cast %131 : i32 to index
      %c2_69 = arith.constant 2 : index
      %142 = memref.load %arg2[%141, %c2_69] : memref<8x4xi32, #tpu.memory_space<smem>>
      %143 = arith.index_cast %142 : i32 to index
      %c0_70 = arith.constant 0 : index
      %144 = vector.load %arg3[%143, %c0_70] : memref<64x128xf32, #tpu.memory_space<vmem>>, vector<1x128xf32>
      %145 = arith.addf %140, %144 : vector<1x128xf32>
      %146 = arith.index_cast %131 : i32 to index
      %c3_71 = arith.constant 3 : index
      %147 = memref.load %arg2[%146, %c3_71] : memref<8x4xi32, #tpu.memory_space<smem>>
      %148 = arith.index_cast %147 : i32 to index
      %c0_72 = arith.constant 0 : index
      %149 = vector.load %arg3[%148, %c0_72] : memref<64x128xf32, #tpu.memory_space<vmem>>, vector<1x128xf32>
      %150 = arith.addf %145, %149 : vector<1x128xf32>
      %cst_73 = arith.constant 2.500000e-01 : f32
      %151 = vector.broadcast %cst_73 : f32 to vector<1x128xf32>
      %152 = arith.mulf %150, %151 : vector<1x128xf32>
      %c5 = arith.constant 5 : index
      %c0_74 = arith.constant 0 : index
      %153 = vector.load %arg7[%c5, %c0_74] : memref<8x128xf32, #tpu.memory_space<vmem>>, vector<1x128xf32>
      tpu.vector_store %arg7[%c5, %c0_74], %152 {strides = array<i32>} : memref<8x128xf32, #tpu.memory_space<vmem>>, vector<1x128xf32>,
      %c8_i32_75 = arith.constant 8 : i32
      %154 = arith.muli %arg0, %c8_i32_75 : i32
      %c6_i32 = arith.constant 6 : i32
      %155 = arith.addi %154, %c6_i32 : i32
      %156 = arith.index_cast %155 : i32 to index
      %c0_76 = arith.constant 0 : index
      %157 = memref.load %arg2[%156, %c0_76] : memref<8x4xi32, #tpu.memory_space<smem>>
      %158 = arith.index_cast %157 : i32 to index
      %c0_77 = arith.constant 0 : index
      %159 = vector.load %arg3[%158, %c0_77] : memref<64x128xf32, #tpu.memory_space<vmem>>, vector<1x128xf32>
      %160 = arith.index_cast %155 : i32 to index
      %c1_78 = arith.constant 1 : index
      %161 = memref.load %arg2[%160, %c1_78] : memref<8x4xi32, #tpu.memory_space<smem>>
      %162 = arith.index_cast %161 : i32 to index
      %c0_79 = arith.constant 0 : index
      %163 = vector.load %arg3[%162, %c0_79] : memref<64x128xf32, #tpu.memory_space<vmem>>, vector<1x128xf32>
      %164 = arith.addf %159, %163 : vector<1x128xf32>
      %165 = arith.index_cast %155 : i32 to index
      %c2_80 = arith.constant 2 : index
      %166 = memref.load %arg2[%165, %c2_80] : memref<8x4xi32, #tpu.memory_space<smem>>
      %167 = arith.index_cast %166 : i32 to index
      %c0_81 = arith.constant 0 : index
      %168 = vector.load %arg3[%167, %c0_81] : memref<64x128xf32, #tpu.memory_space<vmem>>, vector<1x128xf32>
      %169 = arith.addf %164, %168 : vector<1x128xf32>
      %170 = arith.index_cast %155 : i32 to index
      %c3_82 = arith.constant 3 : index
      %171 = memref.load %arg2[%170, %c3_82] : memref<8x4xi32, #tpu.memory_space<smem>>
      %172 = arith.index_cast %171 : i32 to index
      %c0_83 = arith.constant 0 : index
      %173 = vector.load %arg3[%172, %c0_83] : memref<64x128xf32, #tpu.memory_space<vmem>>, vector<1x128xf32>
      %174 = arith.addf %169, %173 : vector<1x128xf32>
      %cst_84 = arith.constant 2.500000e-01 : f32
      %175 = vector.broadcast %cst_84 : f32 to vector<1x128xf32>
      %176 = arith.mulf %174, %175 : vector<1x128xf32>
      %c6 = arith.constant 6 : index
      %c0_85 = arith.constant 0 : index
      %177 = vector.load %arg7[%c6, %c0_85] : memref<8x128xf32, #tpu.memory_space<vmem>>, vector<1x128xf32>
      tpu.vector_store %arg7[%c6, %c0_85], %176 {strides = array<i32>} : memref<8x128xf32, #tpu.memory_space<vmem>>, vector<1x128xf32>,
      %c8_i32_86 = arith.constant 8 : i32
      %178 = arith.muli %arg0, %c8_i32_86 : i32
      %c7_i32 = arith.constant 7 : i32
      %179 = arith.addi %178, %c7_i32 : i32
      %180 = arith.index_cast %179 : i32 to index
      %c0_87 = arith.constant 0 : index
      %181 = memref.load %arg2[%180, %c0_87] : memref<8x4xi32, #tpu.memory_space<smem>>
      %182 = arith.index_cast %181 : i32 to index
      %c0_88 = arith.constant 0 : index
      %183 = vector.load %arg3[%182, %c0_88] : memref<64x128xf32, #tpu.memory_space<vmem>>, vector<1x128xf32>
      %184 = arith.index_cast %179 : i32 to index
      %c1_89 = arith.constant 1 : index
      %185 = memref.load %arg2[%184, %c1_89] : memref<8x4xi32, #tpu.memory_space<smem>>
      %186 = arith.index_cast %185 : i32 to index
      %c0_90 = arith.constant 0 : index
      %187 = vector.load %arg3[%186, %c0_90] : memref<64x128xf32, #tpu.memory_space<vmem>>, vector<1x128xf32>
      %188 = arith.addf %183, %187 : vector<1x128xf32>
      %189 = arith.index_cast %179 : i32 to index
      %c2_91 = arith.constant 2 : index
      %190 = memref.load %arg2[%189, %c2_91] : memref<8x4xi32, #tpu.memory_space<smem>>
      %191 = arith.index_cast %190 : i32 to index
      %c0_92 = arith.constant 0 : index
      %192 = vector.load %arg3[%191, %c0_92] : memref<64x128xf32, #tpu.memory_space<vmem>>, vector<1x128xf32>
      %193 = arith.addf %188, %192 : vector<1x128xf32>
      %194 = arith.index_cast %179 : i32 to index
      %c3_93 = arith.constant 3 : index
      %195 = memref.load %arg2[%194, %c3_93] : memref<8x4xi32, #tpu.memory_space<smem>>
      %196 = arith.index_cast %195 : i32 to index
      %c0_94 = arith.constant 0 : index
      %197 = vector.load %arg3[%196, %c0_94] : memref<64x128xf32, #tpu.memory_space<vmem>>, vector<1x128xf32>
      %198 = arith.addf %193, %197 : vector<1x128xf32>
      %cst_95 = arith.constant 2.500000e-01 : f32
      %199 = vector.broadcast %cst_95 : f32 to vector<1x128xf32>
      %200 = arith.mulf %198, %199 : vector<1x128xf32>
      %c7 = arith.constant 7 : index
      %c0_96 = arith.constant 0 : index
      %201 = vector.load %arg7[%c7, %c0_96] : memref<8x128xf32, #tpu.memory_space<vmem>>, vector<1x128xf32>
      tpu.vector_store %arg7[%c7, %c0_96], %200 {strides = array<i32>} : memref<8x128xf32, #tpu.memory_space<vmem>>, vector<1x128xf32>,
    } else {
    }
    %c0 = arith.constant 0 : index
    %c0_1 = arith.constant 0 : index
    %3 = vector.load %arg7[%c0, %c0_1] : memref<8x128xf32, #tpu.memory_space<vmem>>, vector<8x128xf32>
    %c0_2 = arith.constant 0 : index
    %c0_3 = arith.constant 0 : index
    %4 = vector.load %arg4[%c0_2, %c0_3] : memref<128x128xf32, #tpu.memory_space<vmem>>, vector<128x128xf32>
    %cst = arith.constant dense<0.000000e+00> : vector<8x128xf32>
    %5 = tpu.matmul %3, %4, %cst {dimension_numbers = #tpu.dot_dimension_numbers<[1], [0], [0], [1], [0, 0, 1, 1], [], []>} : vector<8x128xf32>, vector<128x128xf32>, vector<8x128xf32> -> vector<8x128xf32>
    %c0_4 = arith.constant 0 : index
    %c0_5 = arith.constant 0 : index
    %6 = vector.load %arg5[%c0_4, %c0_5] : memref<1x128xf32, #tpu.memory_space<vmem>>, vector<1x128xf32>
    %7 = vector.broadcast %6 : vector<1x128xf32> to vector<8x128xf32>
    %8 = arith.addf %5, %7 : vector<8x128xf32>
    %c0_6 = arith.constant 0 : index
    %c0_7 = arith.constant 0 : index
    %9 = vector.load %arg6[%c0_6, %c0_7] : memref<8x128xf32, #tpu.memory_space<vmem>>, vector<8x128xf32>
    tpu.vector_store %arg6[%c0_6, %c0_7], %8 {strides = array<i32>} : memref<8x128xf32, #tpu.memory_space<vmem>>, vector<8x128xf32>,
    return
  }
  func.func @transform_0(%arg0: i32, %arg1: i32, %arg2: memref<8x4xi32, #tpu.memory_space<smem>>) -> (i32, i32) {
    %c0_i32 = arith.constant 0 : i32
    %c0_i32_0 = arith.constant 0 : i32
    %c0_i32_1 = arith.constant 0 : i32
    return %c0_i32, %c0_i32_0 : i32, i32
  }
  func.func @transform_1(%arg0: i32, %arg1: i32, %arg2: memref<8x4xi32, #tpu.memory_space<smem>>) -> (i32, i32) {
    %c0_i32 = arith.constant 0 : i32
    %c0_i32_0 = arith.constant 0 : i32
    return %c0_i32, %arg1 : i32, i32
  }
  func.func @transform_2(%arg0: i32, %arg1: i32, %arg2: memref<8x4xi32, #tpu.memory_space<smem>>) -> (i32, i32) {
    %c0_i32 = arith.constant 0 : i32
    %c0_i32_0 = arith.constant 0 : i32
    return %c0_i32, %arg1 : i32, i32
  }
  func.func @transform_3(%arg0: i32, %arg1: i32, %arg2: memref<8x4xi32, #tpu.memory_space<smem>>) -> (i32, i32) {
    %c0_i32 = arith.constant 0 : i32
    return %arg0, %arg1 : i32, i32
  }
}

</mosaic_0001>

<bundles_post_ra>
// kernel: tpu_custom_call.1
= control target key start
LH: loop header
LB: loop body
LE: loop exit
PB: predicated region body
PF: predicated region fallthrough
CT: control target
= control target key end

     0   :  { %s723_s0 = inlined_call_operand.vmem [shape: s32[8,4], index: 0, kind: input, shape index: {}]   ;;  %s724_s1 = inlined_call_operand.hbm [shape: f32[64,128], index: 1, kind: input, shape index: {}]   ;;  %s725_s2 = inlined_call_operand.hbm [shape: f32[128,128], index: 2, kind: input, shape index: {}]   ;;  %s726_s3 = inlined_call_operand.vmem [shape: f32[1,128], index: 3, kind: input, shape index: {}]   ;;  %s727_s4 = inlined_call_operand.hbm [shape: f32[8,128], index: 4, kind: output, shape index: {}]  }
   0x1   :  { %s9_s17 = sshll.u32 %s723_s0, 4  ;;  %s10_s17 = int_to_ptr.vmem [resolvable:$true] %s9_s17 }
   0x2   :  { %s490_s18 = scalar_lea.vmem %s10_s17, 128  ;;  %p495_p1 = scmp.lt.s32.totalorder %s10_s17, %s10_s17 }
   0x3   :  { %p491_p0 = scmp.ne.s32.totalorder %s10_s17, %s490_s18  ;;  %p496_p2 = scmp.lt.s32.totalorder %s490_s18, %s490_s18 }
   0x5   :  { %p497_p3 = por %p496_p2, %p495_p1 }
   0x7   :  { %p498_p4 = pnand %p497_p3, %p491_p0 }
   0x9   :  { %501 = shalt.err (!%p498_p4)  }
   0xa   :  { %s576_s19 = smov [#allocation4]  }
   0xb   :  { %12 = dma.vmem_to_smem %s10_s17, 128, %s576_s19, [#allocation3] }
   0xc   :  { %568 = dma.done.wait [#allocation3], 128 }
   0xd   :  { %569 = vsyncadd [#allocation3], 4294967168 }
   0xe   :  { %14 = sfence }
   0xf   :  { %15 = vsyncpa [#allocation6], 0 }
  0x10   :  { %16 = vsyncpa [#allocation9], 0 }
  0x11   :  { %17 = vsyncpa [#allocation7], 0  ;;  %s577_s20 = smov [#allocation5]   ;;  %s502_s23 = scalar_lea.hbm %s724_s1, 1024 }
  0x12   :  { %s23_s21 = sshll.u32 %s577_s20, 4  ;;  %p503_p5 = scmp.ne.s32.totalorder %s724_s1, %s502_s23  ;;  %s24_s21 = int_to_ptr.vmem [resolvable:$true] %s23_s21 }
  0x13   :  { %p506_p6 = scmp.lt.u32.totalorder %s502_s23, %s724_s1 }
  0x15   :  { %p508_p7 = pnand %p506_p6, %p503_p5 }
  0x17   :  { %511 = shalt.err (!%p508_p7)
}
  0x18   :  { %s512_s28 = scalar_lea.vmem %s24_s21, 1024  ;;  %p517_p9 = scmp.lt.s32.totalorder %s24_s21, %s24_s21 }
  0x19   :  { %p513_p8 = scmp.ne.s32.totalorder %s24_s21, %s512_s28  ;;  %p518_p10 = scmp.lt.s32.totalorder %s512_s28, %s512_s28 }
  0x1b   :  { %p519_p11 = por %p518_p10, %p517_p9 }
  0x1d   :  { %p520_p12 = pnand %p519_p11, %p513_p8 }
  0x1f   :  { %523 = shalt.err (!%p520_p12)
}
  0x20   :  { %s578_s29 = smov 128   ;;  %s579_s30 = smov 8  }
  0x21   :  { %29 = dma.hbm_to_vmem [thread:$0]  %s724_s1, 1024, %s24_s21, [#allocation6], %s578_s29, %s578_s29, %s579_s30  }
  0x22   :  { %s580_s7 = smov [#allocation8]   ;;  %s524_s11 = scalar_lea.hbm %s725_s2, 2048 }
  0x23   :  { %s35_s8 = sshll.u32 %s580_s7, 4  ;;  %p525_p13 = scmp.ne.s32.totalorder %s725_s2, %s524_s11  ;;  %s36_s8 = int_to_ptr.vmem [resolvable:$true] %s35_s8 }
  0x24   :  { %p528_p0 = scmp.lt.u32.totalorder %s524_s11, %s725_s2 }
  0x26   :  { %p530_p1 = pnand %p528_p0, %p525_p13 }
  0x28   :  { %533 = shalt.err (!%p530_p1)
}
  0x29   :  { %s534_s16 = scalar_lea.vmem %s36_s8, 2048  ;;  %p539_p3 = scmp.lt.s32.totalorder %s36_s8, %s36_s8 }
  0x2a   :  { %p535_p2 = scmp.ne.s32.totalorder %s36_s8, %s534_s16  ;;  %p540_p4 = scmp.lt.s32.totalorder %s534_s16, %s534_s16 }
  0x2c   :  { %p541_p5 = por %p540_p4, %p539_p3 }
  0x2e   :  { %p542_p6 = pnand %p541_p5, %p535_p2 }
  0x30   :  { %545 = shalt.err (!%p542_p6)
}
  0x31   :  { %41 = dma.hbm_to_vmem [thread:$0]  %s725_s2, 2048, %s36_s8, [#allocation9], %s578_s29, %s578_s29, %s579_s30  }
  0x32   :  { %570 = dma.done.wait [#allocation6], 1024  }
  0x33   :  { %571 = vsyncadd [#allocation6], 4294966272 }
  0x34   :  { %572 = dma.done.wait [#allocation9], 2048  }
  0x35   :  { %573 = vsyncadd [#allocation9], 4294965248  ;;  %v581_v0 = vmov 0.0|0.0   ;;  %vm582_vm0 = vmmov 0   ;;  %v583_v1 = vmov 0.0   ;;  %s56_s18 = sld [smem:[#allocation4]] }
  0x36   :  { %457 = vmatprep.subr.bf16.mxu0 %v581_v0  ;;  %454 = vmatprep.mubr.msk.f32.mxu0 %vm582_vm0, %v583_v1  ;;  %s373_s19 = sld [smem:[#allocation4 + $0x1]]  ;;  %s374_s20 = sld [smem:[#allocation4 + $0x2]]  ;;  %v231_v2 = vld [vmem:[#allocation8] sm:$0xff]  ;;  %v232_v3 = vld [vmem:[#allocation8 + $0x8] sm:$0xff]  ;;  %v233_v4 = vld [vmem:[#allocation8 + $0x10] sm:$0xff] }
  0x37   :  { %s638_s21 = sld [smem:[#allocation4 + $0x3]]  ;;  %s376_s0 = sld [smem:[#allocation4 + $0x80]]  ;;  %v458_v5 = vpack.c.bf16 %v232_v3, %v231_v2  ;;  %v234_v6 = vld [vmem:[#allocation8 + $0x18] sm:$0xff]  ;;  %v235_v8 = vld [vmem:[#allocation8 + $0x20] sm:$0xff]  ;;  %v236_v9 = vld [vmem:[#allocation8 + $0x28] sm:$0xff] }
  0x38   :  { %s640_s22 = sld [smem:[#allocation4 + $0x81]]  ;;  %s642_s23 = sld [smem:[#allocation4 + $0x82]]  ;;  %v461_v7 = vpack.c.bf16 %v234_v6, %v233_v4  ;;  %v237_v12 = vld [vmem:[#allocation8 + $0x30] sm:$0xff]  ;;  %v238_v13 = vld [vmem:[#allocation8 + $0x38] sm:$0xff]  ;;  %v464_v17 = vpack.c.bf16 %v236_v9, %v235_v8  ;;  %v239_v32 = vld [vmem:[#allocation8 + $0x40] sm:$0xff] }
  0x39   :  { %s644_s2 = sld [smem:[#allocation4 + $0x83]]  ;;  %s646_s24 = sld [smem:[#allocation4 + $0x100]]  ;;  %459 = vmatpush3.bf16.msra.mxu0 %v458_v5  ;;  %v467_v31 = vpack.c.bf16 %v238_v13, %v237_v12  ;;  %v240_v34 = vld [vmem:[#allocation8 + $0x48] sm:$0xff]  ;;  %v241_v41 = vld [vmem:[#allocation8 + $0x50] sm:$0xff]  ;;  %v242_v42 = vld [vmem:[#allocation8 + $0x58] sm:$0xff] }
  0x3a   :  { %s648_s25 = sld [smem:[#allocation4 + $0x101]]  ;;  %s650_s26 = sld [smem:[#allocation4 + $0x102]]  ;;  %460 = vmatprep.subr.bf16.mxu0 %v581_v0  ;;  %v470_v39 = vpack.c.bf16 %v240_v34, %v239_v32  ;;  %v243_v46 = vld [vmem:[#allocation8 + $0x60] sm:$0xff]  ;;  %v244_v47 = vld [vmem:[#allocation8 + $0x68] sm:$0xff]  ;;  %v473_v51 = vpack.c.bf16 %v242_v42, %v241_v41  ;;  %v245_v60 = vld [vmem:[#allocation8 + $0x70] sm:$0xff] }
  0x3b   :  { %s652_s27 = sld [smem:[#allocation4 + $0x103]]  ;;  %s57_s28 = scalar_lea.vmem [#allocation5], %s56_s18  ;;  %v476_v1 = vpack.c.bf16 %v244_v47, %v243_v46  ;;  %v246_v3 = vld [vmem:[#allocation8 + $0x78] sm:$0xff] }
  0x3c   :  { %v58_v10 = vld [vmem:[%s57_s28] sm:$0x1]  ;;  %s61_s29 = scalar_lea.vmem [#allocation5], %s373_s19  ;;  %s66_s30 = scalar_lea.vmem [#allocation5], %s374_s20  ;;  %v479_v9 = vpack.c.bf16 %v246_v3, %v245_v60 }
  0x3d   :  { %v62_v11 = vld [vmem:[%s61_s29] sm:$0x1]  ;;  %s79_s5 = scalar_lea.vmem [#allocation5], %s376_s0  ;;  %462 = vmatpush3.bf16.msra.mxu0 %v461_v7  ;;  %s71_s6 = scalar_lea.vmem [#allocation5], %s638_s21 }
  0x3e   :  { %v63_v14 = vadd.f32 %v62_v11, %v58_v10  ;;  %v67_v15 = vld [vmem:[%s66_s30] sm:$0x1]  ;;  %s83_s7 = scalar_lea.vmem [#allocation5], %s640_s22  ;;  %s88_s8 = scalar_lea.vmem [#allocation5], %s642_s23  ;;  %463 = vmatprep.subr.bf16.mxu0 %v581_v0 }
  0x3f   :  { %v80_v16 = vld [vmem:[%s79_s5] sm:$0x1]  ;;  %s101_s9 = scalar_lea.vmem [#allocation5], %s646_s24  ;;  %s93_s12 = scalar_lea.vmem [#allocation5], %s644_s2 }
  0x40   :  { %v72_v18 = vld [vmem:[%s71_s6] sm:$0x1]  ;;  %v68_v21 = vadd.f32 %v67_v15, %v63_v14  ;;  %s105_s10 = scalar_lea.vmem [#allocation5], %s648_s25  ;;  %s110_s11 = scalar_lea.vmem [#allocation5], %s650_s26 }
  0x41   :  { %v84_v19 = vld [vmem:[%s83_s7] sm:$0x1]  ;;  %s663_s13 = sld [smem:[#allocation4 + $0x180]]  ;;  %s115_s14 = scalar_lea.vmem [#allocation5], %s652_s27  ;;  %465 = vmatpush3.bf16.msra.mxu0 %v464_v17 }
  0x42   :  { %v89_v20 = vld [vmem:[%s88_s8] sm:$0x1]  ;;  %v85_v22 = vadd.f32 %v84_v19, %v80_v16  ;;  %v73_v28 = vadd.f32 %v72_v18, %v68_v21  ;;  %s666_s15 = sld [smem:[#allocation4 + $0x181]]  ;;  %s668_s16 = sld [smem:[#allocation4 + $0x182]]  ;;  %466 = vmatprep.subr.bf16.mxu0 %v581_v0 }
  0x43   :  { %v102_v23 = vld [vmem:[%s101_s9] sm:$0x1]  ;;  %s670_s1 = sld [smem:[#allocation4 + $0x183]]  ;;  %s672_s17 = sld [smem:[#allocation4 + $0x200]] }
  0x44   :  { %v106_v24 = vld [vmem:[%s105_s10] sm:$0x1]  ;;  %v90_v29 = vadd.f32 %v89_v20, %v85_v22  ;;  %v74_v35 = vmul.f32 0.25, %v73_v28  ;;  %s675_s18 = sld [smem:[#allocation4 + $0x201]]  ;;  %s677_s19 = sld [smem:[#allocation4 + $0x202]] }
  0x45   :  { %v111_v25 = vld [vmem:[%s110_s11] sm:$0x1]  ;;  %v107_v27 = vadd.f32 %v106_v24, %v102_v23  ;;  %s679_s20 = sld [smem:[#allocation4 + $0x203]]  ;;  %s681_s21 = sld [smem:[#allocation4 + $0x280]]  ;;  %468 = vmatpush3.bf16.msra.mxu0 %v467_v31 }
  0x46   :  { %v94_v26 = vld [vmem:[%s93_s12] sm:$0x1]  ;;  %75 = vst [vmem:[#allocation2] sm:$0x1] %v74_v35  ;;  %s683_s0 = sld [smem:[#allocation4 + $0x281]]  ;;  %s685_s22 = sld [smem:[#allocation4 + $0x282]]  ;;  %469 = vmatprep.subr.bf16.mxu0 %v581_v0 }
  0x47   :  { %v116_v30 = vld [vmem:[%s115_s14] sm:$0x1]  ;;  %v112_v33 = vadd.f32 %v111_v25, %v107_v27  ;;  %v95_v36 = vadd.f32 %v94_v26, %v90_v29  ;;  %s687_s23 = sld [smem:[#allocation4 + $0x283]]  ;;  %s123_s2 = scalar_lea.vmem [#allocation5], %s663_s13 }
  0x48   :  { %v124_v43 = vld [vmem:[%s123_s2] sm:$0x1]  ;;  %s127_s24 = scalar_lea.vmem [#allocation5], %s666_s15  ;;  %s132_s25 = scalar_lea.vmem [#allocation5], %s668_s16 }
  0x49   :  { %v117_v37 = vadd.f32 %v116_v30, %v112_v33  ;;  %v96_v38 = vmul.f32 0.25, %v95_v36  ;;  %v128_v44 = vld [vmem:[%s127_s24] sm:$0x1]  ;;  %s137_s26 = scalar_lea.vmem [#allocation5], %s670_s1  ;;  %s145_s27 = scalar_lea.vmem [#allocation5], %s672_s17  ;;  %471 = vmatpush3.bf16.msra.mxu0 %v470_v39 }
  0x4a   :  { %v133_v45 = vld [vmem:[%s132_s25] sm:$0x1]  ;;  %v129_v48 = vadd.f32 %v128_v44, %v124_v43  ;;  %s149_s28 = scalar_lea.vmem [#allocation5], %s675_s18  ;;  %s154_s29 = scalar_lea.vmem [#allocation5], %s677_s19  ;;  %472 = vmatprep.subr.bf16.mxu0 %v581_v0 }
  0x4b   :  { %v118_v40 = vmul.f32 0.25, %v117_v37  ;;  %97 = vst [vmem:[#allocation2 + $0x1] sm:$0x1] %v96_v38  ;;  %v138_v49 = vld [vmem:[%s137_s26] sm:$0x1]  ;;  %s159_s30 = scalar_lea.vmem [#allocation5], %s679_s20 }
  0x4c   :  { %v146_v50 = vld [vmem:[%s145_s27] sm:$0x1]  ;;  %v134_v54 = vadd.f32 %v133_v45, %v129_v48  ;;  %s167_s5 = scalar_lea.vmem [#allocation5], %s681_s21  ;;  %s171_s6 = scalar_lea.vmem [#allocation5], %s683_s0 }
  0x4d   :  { %119 = vst [vmem:[#allocation2 + $0x2] sm:$0x1] %v118_v40  ;;  %v150_v52 = vld [vmem:[%s149_s28] sm:$0x1]  ;;  %s176_s7 = scalar_lea.vmem [#allocation5], %s685_s22  ;;  %s396_s8 = sld [smem:[#allocation4 + $0x300]]  ;;  %474 = vmatpush3.bf16.msra.mxu0 %v473_v51 }
  0x4e   :  { %v155_v53 = vld [vmem:[%s154_s29] sm:$0x1]  ;;  %v151_v55 = vadd.f32 %v150_v52, %v146_v50  ;;  %v139_v61 = vadd.f32 %v138_v49, %v134_v54  ;;  %s397_s9 = sld [smem:[#allocation4 + $0x301]]  ;;  %s181_s10 = scalar_lea.vmem [#allocation5], %s687_s23  ;;  %475 = vmatprep.subr.bf16.mxu0 %v581_v0 }
  0x4f   :  { %v160_v56 = vld [vmem:[%s159_s30] sm:$0x1]  ;;  %s398_s11 = sld [smem:[#allocation4 + $0x302]]  ;;  %s399_s12 = sld [smem:[#allocation4 + $0x303]] }
  0x50   :  { %v168_v57 = vld [vmem:[%s167_s5] sm:$0x1]  ;;  %v156_v62 = vadd.f32 %v155_v53, %v151_v55  ;;  %v140_v4 = vmul.f32 0.25, %v139_v61  ;;  %s400_s13 = sld [smem:[#allocation4 + $0x380]]  ;;  %s401_s14 = sld [smem:[#allocation4 + $0x381]] }
  0x51   :  { %v172_v58 = vld [vmem:[%s171_s6] sm:$0x1]  ;;  %s402_s15 = sld [smem:[#allocation4 + $0x382]]  ;;  %s704_s16 = sld [smem:[#allocation4 + $0x383]]  ;;  %477 = vmatpush3.bf16.msra.mxu0 %v476_v1 }
  0x52   :  { %v177_v59 = vld [vmem:[%s176_s7] sm:$0x1]  ;;  %v173_v63 = vadd.f32 %v172_v58, %v168_v57  ;;  %v161_v5 = vadd.f32 %v160_v56, %v156_v62  ;;  %141 = vst [vmem:[#allocation2 + $0x3] sm:$0x1] %v140_v4  ;;  %478 = vmatprep.subr.bf16.mxu0 %v581_v0  ;;  %s584_s24 = smov [#allocation10]  }
  0x53   :  { %v182_v2 = vld [vmem:[%s181_s10] sm:$0x1]  ;;  %s189_s1 = scalar_lea.vmem [#allocation5], %s396_s8  ;;  %s331_s25 = sshll.u32 %s584_s24, 4  ;;  %s332_s25 = int_to_ptr.vmem [resolvable:$true] %s331_s25 }
  0x54   :  { %v178_v6 = vadd.f32 %v177_v59, %v173_v63  ;;  %v162_v7 = vmul.f32 0.25, %v161_v5  ;;  %v190_v11 = vld [vmem:[%s189_s1] sm:$0x1]  ;;  %s193_s17 = scalar_lea.vmem [#allocation5], %s397_s9  ;;  %s546_s26 = scalar_lea.vmem %s332_s25, 128 }
  0x55   :  { %v194_v12 = vld [vmem:[%s193_s17] sm:$0x1]  ;;  %s198_s18 = scalar_lea.vmem [#allocation5], %s398_s11  ;;  %s203_s19 = scalar_lea.vmem [#allocation5], %s399_s12  ;;  %480 = vmatpush3.bf16.msra.mxu0 %v479_v9 }
  0x56   :  { %v183_v8 = vadd.f32 %v182_v2, %v178_v6  ;;  %163 = vst [vmem:[#allocation2 + $0x4] sm:$0x1] %v162_v7  ;;  %v195_v13 = vadd.f32 %v194_v12, %v190_v11  ;;  %v199_v14 = vld [vmem:[%s198_s18] sm:$0x1]  ;;  %s211_s20 = scalar_lea.vmem [#allocation5], %s400_s13  ;;  %s215_s21 = scalar_lea.vmem [#allocation5], %s401_s14 }
  0x57   :  { %v204_v15 = vld [vmem:[%s203_s19] sm:$0x1]  ;;  %s220_s0 = scalar_lea.vmem [#allocation5], %s402_s15  ;;  %s225_s22 = scalar_lea.vmem [#allocation5], %s704_s16 }
  0x58   :  { %v184_v10 = vmul.f32 0.25, %v183_v8  ;;  %v212_v16 = vld [vmem:[%s211_s20] sm:$0x1]  ;;  %v200_v18 = vadd.f32 %v199_v14, %v195_v13  ;;  %p547_p7 = scmp.ne.s32.totalorder %s332_s25, %s546_s26  ;;  %p551_p8 = scmp.lt.s32.totalorder %s332_s25, %s332_s25 }
  0x59   :  { %v216_v17 = vld [vmem:[%s215_s21] sm:$0x1]  ;;  %p552_p9 = scmp.lt.s32.totalorder %s546_s26, %s546_s26 }
  0x5a   :  { %185 = vst [vmem:[#allocation2 + $0x5] sm:$0x1] %v184_v10  ;;  %v217_v0 = vadd.f32 %v216_v17, %v212_v16  ;;  %v221_v19 = vld [vmem:[%s220_s0] sm:$0x1]  ;;  %v205_v21 = vadd.f32 %v204_v15, %v200_v18 }
  0x5b   :  { %v226_v20 = vld [vmem:[%s225_s22] sm:$0x1]  ;;  %p553_p10 = por %p552_p9, %p551_p8 }
  0x5c   :  { %v222_v22 = vadd.f32 %v221_v19, %v217_v0  ;;  %v206_v23 = vmul.f32 0.25, %v205_v21  ;;  %v404_v27 = vld [vmem:[%s726_s3] ss:$0 sm:$0xff] }
  0x5d   :  { %p554_p11 = pnand %p553_p10, %p547_p7 }
  0x5e   :  { %v227_v24 = vadd.f32 %v226_v20, %v222_v22  ;;  %207 = vst [vmem:[#allocation2 + $0x6] sm:$0x1] %v206_v23 }
  0x60   :  { %v228_v25 = vmul.f32 0.25, %v227_v24 }
  0x62   :  { %229 = vst [vmem:[#allocation2 + $0x7] sm:$0x1] %v228_v25 }
  0x69   :  { %v230_v26 = vld [vmem:[#allocation2] sm:$0xff] }
  0x6a   :  { %455 = vmatmul.mubr.f32.vlgmr.msra.gmra.mrb[0].mxu0 %v230_v26 }
 0x13d   :  { %v320_v28 = vpop.f32.mrb[0].mxu0 }
 0x13e   :  { %v321_v29 = vadd.f32 %v404_v27, %v320_v28  ;;  %v456_v30 = vpop.f32.mrb[1].mxu0 }
 0x140   :  { %324 = vst [vmem:[#allocation10] sm:$0xff] %v321_v29 }
 0x141   :  { %557 = shalt.err (!%p554_p11)
}
 0x142   :  { %s558_s29 = scalar_lea.hbm %s727_s4, 128 }
 0x143   :  { %p559_p12 = scmp.ne.s32.totalorder %s727_s4, %s558_s29  ;;  %p562_p13 = scmp.lt.u32.totalorder %s558_s29, %s727_s4 }
 0x145   :  { %p564_p0 = pnand %p562_p13, %p559_p12 }
 0x147   :  { %567 = shalt.err (!%p564_p0)
}
 0x148   :  { %334 = dma.vmem_to_hbm [thread:$0]  %s332_s25, 128, %s727_s4, [#allocation7]  }
 0x149   :  { %574 = dma.done.wait [#allocation7], 128  }
 0x14a   :  { %575 = vsyncadd [#allocation7], 4294967168 }
 0x14b   :  { %338 = vsyncpa [#allocation6], 1 }
 0x14c   :  { %339 = vsyncpa [#allocation9], 1 }
 0x14d   :  { %340 = vsyncpa [#allocation7], 1 }

</bundles_post_ra>
